<compile_context>
chip_gen: v6e
topology: v6e:2x2x1
jax: 0.10.0
libtpu: 0.0.40
codegen_flags: <defaults>
</compile_context>

<pallas_src>
import functools

import jax
import jax.numpy as jnp
from jax.experimental import pallas as pl
from jax.experimental.pallas import tpu as pltpu

ROWS = 100                 # fixed by the module's .view(-1, 100, nhid)
_FLATTEN_NHID_BELOW = 128  # flatten nhB for small nhid (dense DMA, no lane pad)


def _round_up(x, m):
    return (x + m - 1) // m * m


def _vmem_budgets():
    """Per-generation VMEM sizing (v5e/v6e: 128 MiB, v7x: 64 MiB per TC)."""
    cap = None
    get_info = getattr(pltpu, "get_tpu_info", None)
    if get_info is not None:
        try:
            cap = getattr(get_info(), "vmem_capacity_bytes", None)
        except Exception:
            cap = None
    if not cap:
        cap = 64 * 1024 * 1024          # conservative default = v7x per-TC VMEM
    limit = int(cap * 0.85)             # headroom for compiler scratch
    budget = max(limit - 8 * 1024 * 1024, limit // 2)
    return budget, limit


def _choose_tb(batch, nhid, vmem_budget):
    """Batches processed per grid step, sized against the VMEM budget."""
    rows_sub = _round_up(ROWS, 8)       # sublane padding of the ROWS dim
    nhid_lane = _round_up(nhid, 128)    # lane padding of the nhid dim
    if nhid < _FLATTEN_NHID_BELOW:
        dma = 2 * ROWS * nhid                 # dense, double-buffered DMA tile
        interm = 3 * rows_sub * nhid_lane     # reshaped copy + product (+slack)
    else:
        dma = 2 * rows_sub * nhid_lane        # padded, double-buffered DMA tile
        interm = 2 * rows_sub * nhid_lane     # product intermediate (+slack)
    small = 2 * nhid_lane + 2 * _round_up(ROWS, 128)   # nhA + output tiles
    per_batch_bytes = 4 * (dma + interm + small)       # f32
    tb = int(vmem_budget // per_batch_bytes)
    if tb >= batch:
        return batch
    # (8,128) rule: when tb < batch the sublane dim of the 2-D blocks must be
    # a multiple of 8.
    # TODO(synk): for extremely large nhid (per-batch tile > budget/8) this
    # clamp can exceed the VMEM budget; a reduction split over nhid (extra
    # "arbitrary" grid axis + accumulator) would be needed, not implemented.
    return max(8, (tb // 8) * 8)


def _axb_kernel(nhA_ref, nhB_ref, o_ref):
    # nhA_ref: (tb, nhid); nhB_ref: (tb, ROWS, nhid) or flattened (tb, ROWS*nhid)
    a = nhA_ref[...].astype(jnp.float32)                 # (tb, nhid)
    tb, nhid = a.shape
    b = nhB_ref[...].astype(jnp.float32).reshape(tb, ROWS, nhid)
    # VPU broadcast-multiply + XLU lane reduce, f32 accumulate. The op is
    # HBM-bound; a per-batch MXU matvec would use 1 of 128/256 output columns.
    # TODO(synk): on v7x (3.2 TB/s HBM) re-check in the bundle whether the XLU
    # reduce becomes the binding slot for small nhid; if so switch this line to
    # jnp.einsum('brk,bk->br', b, a, preferred_element_type=jnp.float32).
    o_ref[...] = jnp.sum(b * a[:, None, :], axis=-1).astype(o_ref.dtype)


@functools.partial(jax.jit, static_argnums=(2,))
def axb_forward(nhA, nhB, nhid):
    """nhA: (..., nhid) f32, nhB: (..., 100, nhid) f32 -> (batch, 100) f32."""
    # Mirror the PyTorch .view(-1, ...) reshapes (glue in plain JAX).
    nhA = nhA.reshape(-1, nhid)
    nhB = nhB.reshape(-1, ROWS, nhid)
    batch = nhB.shape[0]
    assert nhA.shape[0] == batch, "batch mismatch between nhA and nhB"

    vmem_budget, vmem_limit = _vmem_budgets()
    tb = _choose_tb(batch, nhid, vmem_budget)
    grid = (pl.cdiv(batch, tb),)

    if nhid < _FLATTEN_NHID_BELOW:
        # Metadata-only reshape of a contiguous array: the HBM->VMEM DMA becomes
        # one dense ROWS*nhid run per batch instead of ROWS strided sub-rows,
        # and the VMEM tile is not padded nhid->128 / 100->104.
        nhB_in = nhB.reshape(batch, ROWS * nhid)
        nhB_spec = pl.BlockSpec((tb, ROWS * nhid), lambda i: (i, 0))
    else:
        nhB_in = nhB
        nhB_spec = pl.BlockSpec((tb, ROWS, nhid), lambda i: (i, 0, 0))

    grid_spec = pltpu.PrefetchScalarGridSpec(
        num_scalar_prefetch=0,
        grid=grid,
        in_specs=[pl.BlockSpec((tb, nhid), lambda i: (i, 0)), nhB_spec],
        out_specs=pl.BlockSpec((tb, ROWS), lambda i: (i, 0)),
    )

    itemsize = 4
    cost = pl.CostEstimate(
        flops=2 * batch * ROWS * nhid,
        transcendentals=0,
        bytes_accessed=itemsize
        * (batch * ROWS * nhid + batch * nhid + batch * ROWS),
    )

    return pl.pallas_call(
        _axb_kernel,
        out_shape=jax.ShapeDtypeStruct((batch, ROWS), jnp.float32),
        grid_spec=grid_spec,
        compiler_params=pltpu.CompilerParams(
            # TODO(synk): on v7x confirm in the trace that both TensorCores get
            # batch-grid slices; if not, switch to pltpu.CORE_PARALLEL or an
            # explicit pl.core_map over create_tensorcore_mesh.
            dimension_semantics=("parallel",),
            vmem_limit_bytes=vmem_limit,
        ),
        cost_estimate=cost,
    )(nhA, nhB_in)


if __name__ == "__main__":
    nhid = 32
    B = 4

    key = jax.random.PRNGKey(0)
    kA, kB = jax.random.split(key)
    nhA = jax.random.normal(kA, (B, nhid), dtype=jnp.float32)
    nhB = jax.random.normal(kB, (B, ROWS, nhid), dtype=jnp.float32)

    out = axb_forward(nhA, nhB, nhid)
    out = jax.block_until_ready(out)

    # Reference check against plain JAX (same math as torch.bmm).
    ref = jnp.einsum("bik,bk->bi", nhB, nhA)
    assert out.shape == (B, ROWS)
    assert jnp.allclose(out, ref, atol=1e-5, rtol=1e-5)

    print("KERNEL_OK")
</pallas_src>

<mosaic_0001>
module attributes {stable_mosaic.version = 11 : i64} {
  func.func @_axb_kernel(%arg0: i32, %arg1: memref<4x32xf32, #tpu.memory_space<vmem>>, %arg2: memref<4x3200xf32, #tpu.memory_space<vmem>>, %arg3: memref<4x100xf32, #tpu.memory_space<vmem>>) attributes {dimension_semantics = [#tpu.dimension_semantics<parallel>], iteration_bounds = array<i64: 1>, scalar_prefetch = 0 : i64, scratch_operands = 0 : i64, tpu.core_type = #tpu.core_type<tc>, window_params = [{transform_indices = @transform_0, window_bounds = array<i64: 4, 32>}, {transform_indices = @transform_1, window_bounds = array<i64: 4, 3200>}, {transform_indices = @transform_2, window_bounds = array<i64: 4, 100>}]} {
    %c0 = arith.constant 0 : index
    %c0_0 = arith.constant 0 : index
    %0 = vector.load %arg1[%c0, %c0_0] : memref<4x32xf32, #tpu.memory_space<vmem>>, vector<4x32xf32>
    %c0_1 = arith.constant 0 : index
    %c0_2 = arith.constant 0 : index
    %1 = vector.load %arg2[%c0_1, %c0_2] : memref<4x3200xf32, #tpu.memory_space<vmem>>, vector<4x3200xf32>
    %2 = vector.shape_cast %1 : vector<4x3200xf32> to vector<4x100x32xf32>
    %3 = vector.shape_cast %0 : vector<4x32xf32> to vector<4x1x32xf32>
    %4 = vector.broadcast %3 : vector<4x1x32xf32> to vector<4x100x32xf32>
    %5 = arith.mulf %2, %4 : vector<4x100x32xf32>
    %cst = arith.constant dense<0.000000e+00> : vector<4x100xf32>
    %6 = vector.multi_reduction <add>, %5, %cst [2] : vector<4x100x32xf32> to vector<4x100xf32>
    %c0_3 = arith.constant 0 : index
    %c0_4 = arith.constant 0 : index
    %7 = vector.load %arg3[%c0_3, %c0_4] : memref<4x100xf32, #tpu.memory_space<vmem>>, vector<4x100xf32>
    tpu.vector_store %arg3[%c0_3, %c0_4], %6 {strides = array<i32>} : memref<4x100xf32, #tpu.memory_space<vmem>>, vector<4x100xf32>,
    return
  }
  func.func @transform_0(%arg0: i32) -> (i32, i32) {
    %c0_i32 = arith.constant 0 : i32
    %c0_i32_0 = arith.constant 0 : i32
    return %arg0, %c0_i32 : i32, i32
  }
  func.func @transform_1(%arg0: i32) -> (i32, i32) {
    %c0_i32 = arith.constant 0 : i32
    %c0_i32_0 = arith.constant 0 : i32
    return %arg0, %c0_i32 : i32, i32
  }
  func.func @transform_2(%arg0: i32) -> (i32, i32) {
    %c0_i32 = arith.constant 0 : i32
    %c0_i32_0 = arith.constant 0 : i32
    return %arg0, %c0_i32 : i32, i32
  }
}

</mosaic_0001>

<bundles_post_ra>
// kernel: axb_forward.1
= control target key start
LH: loop header
LB: loop body
LE: loop exit
PB: predicated region body
PF: predicated region fallthrough
CT: control target
= control target key end

     0   :  { %s1994_s11 = smov 32   ;;  %s1995_s12 = smov 96   ;;  %s3106_s0 = inlined_call_operand.vmem [shape: f32[4,32], index: 0, kind: input, shape index: {}]   ;;  %s3107_s1 = inlined_call_operand.vmem [shape: f32[4,3200], index: 1, kind: input, shape index: {}]   ;;  %s3108_s2 = inlined_call_operand.hbm [shape: f32[4,100], index: 2, kind: output, shape index: {}]  }
   0x1   :  { %v2020_v0 = vld [vmem:[%s3107_s1] sm:$0xff]  ;;  %v2029_v1 = vld [vmem:[%s3107_s1 + $0x8] sm:$0xff]  ;;  %s1996_s15 = smov 64  }
   0x2   :  { %37 = vrot.lane.b32.xlu1 %v2020_v0, %s1994_s11  ;;  %29 = vrot.lane.b32.xlu0 %v2020_v0, %s1995_s12 }
   0x6   :  { %44 = vrot.lane.b32.xlu1 %v2029_v1, %s1995_s12  ;;  %33 = vrot.lane.b32.xlu0 %v2020_v0, %s1996_s15 }
   0x7   :  { %7 = vsyncpa [#allocation3], 0  ;;  %v2042_v2 = vld [vmem:[%s3107_s1 + $0x10] sm:$0xff]  ;;  %v2051_v3 = vld [vmem:[%s3107_s1 + $0x18] sm:$0xff]  ;;  %v1997_v13 = vmov 1966171168   ;;  %v3109_v15 = vlaneseq }
   0x8   :  { %v2064_v4 = vld [vmem:[%s3107_s1 + $0x20] sm:$0xff]  ;;  %v2073_v5 = vld [vmem:[%s3107_s1 + $0x28] sm:$0xff]  ;;  %v2086_v6 = vld [vmem:[%s3107_s1 + $0x30] sm:$0xff]  ;;  %v1112_v14 = vunpack.c.l.s4 %v1997_v13  ;;  %v1998_v18 = vmov 1983009808   ;;  %v27_v35 = vrot.slane %v2020_v0, 4 }
   0x9   :  { %v2095_v7 = vld [vmem:[%s3107_s1 + $0x38] sm:$0xff]  ;;  %v2108_v8 = vld [vmem:[%s3107_s1 + $0x40] sm:$0xff]  ;;  %v2117_v9 = vld [vmem:[%s3107_s1 + $0x48] sm:$0xff]  ;;  %v2156_v17 = vshrl.u32 %v3109_v15, 7  ;;  %v254_v19 = vunpack.c.l.s4 %v1998_v18  ;;  %v1999_v22 = vmov 1934713408  }
   0xa   :  { %52 = vrot.lane.b32.xlu1 %v2029_v1, %s1994_s11  ;;  %48 = vrot.lane.b32.xlu0 %v2029_v1, %s1996_s15  ;;  %3127 = vst [vmem:[#allocation5_spill] sm:$0xff] %v2108_v8  ;;  %3128 = vst [vmem:[#allocation6_spill] sm:$0xff] %v2117_v9  ;;  %v2130_v10 = vld [vmem:[%s3107_s1 + $0x50] sm:$0xff]  ;;  %v2139_v11 = vld [vmem:[%s3107_s1 + $0x58] sm:$0xff]  ;;  %v1113_v16 = vunpack.c.0.s8 %v1112_v14  ;;  %v271_v23 = vunpack.c.l.s4 %v1999_v22  ;;  %v42_v43 = vrot.slane %v2029_v1, 4  ;;  %v57_v44 = vrot.slane %v2042_v2, 4 }
   0xb   :  { %3129 = vst [vmem:[#allocation7_spill] sm:$0xff] %v2130_v10  ;;  %3130 = vst [vmem:[#allocation8_spill] sm:$0xff] %v2139_v11  ;;  %v25_v12 = vld [vmem:[%s3107_s1 + $0x60] sm:$0xf]  ;;  %v255_v24 = vunpack.c.0.s8 %v254_v19  ;;  %v1129_v28 = vsub.s32 0, %v2156_v17  ;;  %v72_v54 = vrot.slane %v2051_v3, 4 }
   0xc   :  { %3131 = vst [vmem:[#allocation9_spill] sm:$0xff] %v2156_v17  ;;  %v1116_v20 = vsub.s32 %v1113_v16, %v2156_v17  ;;  %v1962_v21 = vld.sshfl [vmem:[%s3106_s0] sm:$0x33 pattern:$0x75316420]  ;;  %v272_v31 = vunpack.c.0.s8 %v271_v23  ;;  %v87_v56 = vrot.slane %v2064_v4, 4 }
   0xd   :  { %v1110_v32 = vcombine.high %v1962_v21, %v1962_v21  ;;  %v2164_v33 = vsub.s32 %v255_v24, %v2156_v17  ;;  %vm1447_vm0 = vcmask 261120   ;;  %vm1484_vm1 = vcmask 257024  }
   0xe   :  { %63 = vrot.lane.b32.xlu1 %v2042_v2, %s1996_s15  ;;  %59 = vrot.lane.b32.xlu0 %v2042_v2, %s1995_s12  ;;  %v1117_v25 = vrot.slane %v1962_v21, %v1116_v20  ;;  %v2173_v45 = vsub.s32 %v272_v31, %v2156_v17  ;;  %vm1668_vm2 = vcmask 130112   ;;  %vm1675_vm3 = vcmask 195712  }
   0xf   :  { %v1124_v46 = vrot.slane %v1110_v32, %v1116_v20  ;;  %vm1682_vm4 = vcmask 261312   ;;  %vm1689_vm5 = vcmask 326912   ;;  %vm1696_vm6 = vcmask 392512  }
  0x10   :  { %v1125_v36 = vcombine.high %v1117_v25, %v1117_v25  ;;  %v2167_v40 = vrot.slane %v1117_v25, %v1129_v28  ;;  %v102_v25 = vrot.slane %v2073_v5, 4  ;;  %vm1703_vm7 = vcmask 458112  }
  0x11   :  { %v2204_v16 = vrot.slane %v1124_v46, %v1129_v28  ;;  %vm1710_vm8 = vcmask 523712   ;;  %vm1717_vm9 = vcmask 589312   ;;  %vm1724_vm10 = vcmask 654912  }
  0x12   :  { %74 = vrot.lane.b32.xlu1 %v2051_v3, %s1995_s12  ;;  %67 = vrot.lane.b32.xlu0 %v2042_v2, %s1994_s11  ;;  %v2181_v50 = vrot.slane %v1125_v36, %v1129_v28  ;;  %v2189_v55 = vcombine.high %v2167_v40, %v2167_v40  ;;  %vm1731_vm11 = vcmask 720512   ;;  %vm1738_vm12 = vcmask 786112  }
  0x13   :  { %vm1745_vm13 = vcmask 851712   ;;  %vm1939_vm14 = vcmask 1041409   ;;  %vm1941_vm15 = vcmask 1042434  }
  0x14   :  { %v2202_v14 = vcombine.high %v2181_v50, %v2181_v50 }
  0x16   :  { %82 = vrot.lane.b32.xlu1 %v2051_v3, %s1994_s11  ;;  %78 = vrot.lane.b32.xlu0 %v2051_v3, %s1996_s15 }
  0x1a   :  { %93 = vrot.lane.b32.xlu1 %v2064_v4, %s1996_s15  ;;  %89 = vrot.lane.b32.xlu0 %v2064_v4, %s1995_s12 }
  0x1e   :  { %104 = vrot.lane.b32.xlu1 %v2073_v5, %s1995_s12  ;;  %97 = vrot.lane.b32.xlu0 %v2064_v4, %s1994_s11 }
  0x22   :  { %112 = vrot.lane.b32.xlu1 %v2073_v5, %s1994_s11  ;;  %108 = vrot.lane.b32.xlu0 %v2073_v5, %s1996_s15 }
  0x26   :  { %123 = vrot.lane.b32.xlu1 %v2086_v6, %s1996_s15  ;;  %119 = vrot.lane.b32.xlu0 %v2086_v6, %s1995_s12 }
  0x2a   :  { %134 = vrot.lane.b32.xlu1 %v2095_v7, %s1995_s12  ;;  %127 = vrot.lane.b32.xlu0 %v2086_v6, %s1994_s11 }
  0x2e   :  { %142 = vrot.lane.b32.xlu1 %v2095_v7, %s1994_s11  ;;  %138 = vrot.lane.b32.xlu0 %v2095_v7, %s1996_s15 }
  0x32   :  { %153 = vrot.lane.b32.xlu1 %v2108_v8, %s1996_s15  ;;  %149 = vrot.lane.b32.xlu0 %v2108_v8, %s1995_s12 }
  0x36   :  { %164 = vrot.lane.b32.xlu1 %v2117_v9, %s1995_s12  ;;  %157 = vrot.lane.b32.xlu0 %v2108_v8, %s1994_s11 }
  0x3a   :  { %172 = vrot.lane.b32.xlu1 %v2117_v9, %s1994_s11  ;;  %168 = vrot.lane.b32.xlu0 %v2117_v9, %s1996_s15 }
  0x3e   :  { %183 = vrot.lane.b32.xlu1 %v2130_v10, %s1996_s15  ;;  %179 = vrot.lane.b32.xlu0 %v2130_v10, %s1995_s12 }
  0x42   :  { %194 = vrot.lane.b32.xlu1 %v2139_v11, %s1995_s12  ;;  %187 = vrot.lane.b32.xlu0 %v2130_v10, %s1994_s11 }
  0x46   :  { %202 = vrot.lane.b32.xlu1 %v2139_v11, %s1994_s11  ;;  %198 = vrot.lane.b32.xlu0 %v2139_v11, %s1996_s15 }
  0x4a   :  { %246 = vrot.lane.b32.xlu1 %v25_v12, %s1996_s15  ;;  %243 = vrot.lane.b32.xlu0 %v25_v12, %s1995_s12 }
  0x4e   :  { %249 = vrot.lane.b32.xlu0 %v25_v12, %s1994_s11 }
  0x74   :  { %v38_v26 = vpop.permute.xlu1 %37  ;;  %v30_v27 = vpop.permute.xlu0 %29 }
  0x75   :  { %v39_v29 = vrot.slane %v38_v26, 4  ;;  %v31_v30 = vrot.slane %v30_v27, 4  ;;  %v260_v34 = vcombine.low %v30_v27, %v38_v26 }
  0x77   :  { %v294_v37 = vcombine.low %v31_v30, %v39_v29  ;;  %v2176_v47 = vrot.slane %v260_v34, %v2164_v33  ;;  %v117_v34 = vrot.slane %v2086_v6, 4 }
  0x78   :  { %v45_v38 = vpop.permute.xlu1 %44  ;;  %v34_v39 = vpop.permute.xlu0 %33 }
  0x79   :  { %v35_v41 = vrot.slane %v34_v39, 4  ;;  %v252_v42 = vcombine.low %v2020_v0, %v34_v39  ;;  %v2184_v51 = vrot.slane %v294_v37, %v2164_v33  ;;  %v46_v57 = vrot.slane %v45_v38, 4 }
  0x7a   :  { %v1126_v0 = vcombine.high %v1124_v46, %v1124_v46 }
  0x7b   :  { %v2179_v48 = vrot.slane %v252_v42, %v2164_v33  ;;  %v286_v49 = vcombine.low %v27_v35, %v35_v41  ;;  %v2233_v35 = vcombine.high %v2204_v16, %v2204_v16 }
  0x7c   :  { %v53_v52 = vpop.permute.xlu1 %52  ;;  %v49_v53 = vpop.permute.xlu0 %48  ;;  %v2227_v30 = vrot.slane %v1126_v0, %v1129_v28 }
  0x7d   :  { %v268_v58 = vcombine.low %v2179_v48, %v2176_v47  ;;  %v2195_v59 = vrot.slane %v286_v49, %v2164_v33  ;;  %v54_v60 = vrot.slane %v53_v52, 4  ;;  %v328_v61 = vcombine.low %v45_v38, %v53_v52 }
  0x7e   :  { %v50_v62 = vrot.slane %v49_v53, 4  ;;  %v320_v63 = vcombine.low %v2029_v1, %v49_v53  ;;  %3132 = vst [vmem:[#allocation10_spill] sm:$0xff] %v2227_v30  ;;  %v2250_v52 = vcombine.high %v2227_v30, %v2227_v30 }
  0x7f   :  { %v302_v12 = vcombine.low %v2195_v59, %v2184_v51  ;;  %v362_v13 = vcombine.low %v46_v57, %v54_v60  ;;  %v2207_v18 = vrot.slane %v328_v61, %v2164_v33  ;;  %v2213_v22 = vrot.slane %v268_v58, %v2173_v45 }
  0x80   :  { %v2210_v19 = vrot.slane %v320_v63, %v2164_v33  ;;  %v354_v20 = vcombine.low %v42_v43, %v50_v62  ;;  %v64_v21 = vpop.permute.xlu1 %63  ;;  %v60_v1 = vpop.permute.xlu0 %59 }
  0x81   :  { %v2216_v23 = vrot.slane %v362_v13, %v2164_v33  ;;  %v65_v24 = vrot.slane %v64_v21, 4  ;;  %v2225_v29 = vrot.slane %v302_v12, %v2173_v45  ;;  %v388_v31 = vcombine.low %v2042_v2, %v64_v21 }
  0x82   :  { %v336_v26 = vcombine.low %v2210_v19, %v2207_v18  ;;  %v2222_v27 = vrot.slane %v354_v20, %v2164_v33  ;;  %v1155_v39 = vmul.f32 %v2167_v40, %v2213_v22  ;;  %v61_v41 = vrot.slane %v60_v1, 4 }
  0x83   :  { %v422_v32 = vcombine.low %v57_v44, %v65_v24  ;;  %v1156_v28 = vmul.f32 %v2189_v55, %v2225_v29  ;;  %v2254_v57 = vrot.slane %v388_v31, %v2164_v33 }
  0x84   :  { %v370_v36 = vcombine.low %v2222_v27, %v2216_v23  ;;  %v75_v37 = vpop.permute.xlu1 %74  ;;  %v68_v38 = vpop.permute.xlu0 %67  ;;  %v2242_v2 = vrot.slane %v336_v26, %v2173_v45 }
  0x85   :  { %v69_v42 = vrot.slane %v68_v38, 4  ;;  %v396_v43 = vcombine.low %v60_v1, %v68_v38  ;;  %v1351_v46 = vcombine.low %v1155_v39, %v1156_v28  ;;  %v2261_v62 = vrot.slane %v422_v32, %v2164_v33 }
  0x86   :  { %v2246_v49 = vrot.slane %v370_v36, %v2173_v45  ;;  %v1157_v13 = vmul.f32 %v2167_v40, %v2242_v2  ;;  %v76_v21 = vrot.slane %v75_v37, 4 }
  0x87   :  { %v2257_v58 = vrot.slane %v396_v43, %v2164_v33  ;;  %v430_v60 = vcombine.low %v61_v41, %v69_v42  ;;  %v1448_v12 = vsel %vm1447_vm0, %v1351_v46, 0.0 }
  0x88   :  { %v83_v63 = vpop.permute.xlu1 %82  ;;  %v79_v0 = vpop.permute.xlu0 %78  ;;  %v1158_v20 = vmul.f32 %v2189_v55, %v2246_v49  ;;  %1449 = vadd.xlane.f32.xlu1 %v1448_v12  ;;  %v269_v12 = vcombine.high %v2179_v48, %v2176_v47  ;;  %v371_v47 = vcombine.high %v2222_v27, %v2216_v23 }
  0x89   :  { %v404_v1 = vcombine.low %v2254_v57, %v2257_v58  ;;  %v2271_v24 = vrot.slane %v430_v60, %v2164_v33  ;;  %v84_v26 = vrot.slane %v83_v63, 4  ;;  %v464_v31 = vcombine.low %v75_v37, %v83_v63 }
  0x8a   :  { %v80_v32 = vrot.slane %v79_v0, 4  ;;  %v456_v36 = vcombine.low %v2051_v3, %v79_v0  ;;  %v1352_v38 = vcombine.low %v1157_v13, %v1158_v20  ;;  %v303_v13 = vcombine.high %v2195_v59, %v2184_v51 }
  0x8b   :  { %v438_v39 = vcombine.low %v2261_v62, %v2271_v24  ;;  %v498_v28 = vcombine.low %v76_v21, %v84_v26  ;;  %v2277_v41 = vrot.slane %v404_v1, %v2173_v45  ;;  %v2281_v43 = vrot.slane %v464_v31, %v2164_v33 }
  0x8c   :  { %v2284_v46 = vrot.slane %v456_v36, %v2164_v33  ;;  %v490_v37 = vcombine.low %v72_v54, %v80_v32  ;;  %v94_v60 = vpop.permute.xlu1 %93  ;;  %v90_v63 = vpop.permute.xlu0 %89  ;;  %v1451_v0 = vsel %vm1447_vm0, %v1352_v38, 0.0  ;;  %v337_v1 = vcombine.high %v2210_v19, %v2207_v18 }
  0x8d   :  { %v2294_v20 = vrot.slane %v498_v28, %v2164_v33  ;;  %v95_v21 = vrot.slane %v94_v60, 4  ;;  %1452 = vadd.xlane.f32.xlu0 %v1451_v0  ;;  %v2304_v26 = vrot.slane %v438_v39, %v2173_v45  ;;  %v524_v48 = vcombine.low %v2064_v4, %v94_v60 }
  0x8e   :  { %v472_v3 = vcombine.low %v2284_v46, %v2281_v43  ;;  %v2301_v54 = vrot.slane %v490_v37, %v2164_v33  ;;  %v1159_v32 = vmul.f32 %v2167_v40, %v2277_v41  ;;  %v91_v27 = vrot.slane %v90_v63, 4 }
  0x8f   :  { %v558_v51 = vcombine.low %v87_v56, %v95_v21  ;;  %v1160_v36 = vmul.f32 %v2189_v55, %v2304_v26  ;;  %v2322_v56 = vrot.slane %v269_v12, %v2173_v45  ;;  %v2328_v37 = vrot.slane %v337_v1, %v2173_v45 }
  0x90   :  { %v506_v18 = vcombine.low %v2301_v54, %v2294_v20  ;;  %v105_v19 = vpop.permute.xlu1 %104  ;;  %v98_v31 = vpop.permute.xlu0 %97  ;;  %v2319_v23 = vrot.slane %v472_v3, %v2173_v45  ;;  %v2331_v60 = vrot.slane %v303_v13, %v2173_v45  ;;  %v2334_v0 = vrot.slane %v524_v48, %v2164_v33 }
  0x91   :  { %v99_v38 = vrot.slane %v98_v31, 4  ;;  %v532_v4 = vcombine.low %v90_v63, %v98_v31  ;;  %v1353_v39 = vcombine.low %v1159_v32, %v1160_v36  ;;  %v2340_v12 = vrot.slane %v371_v47, %v2173_v45 }
  0x92   :  { %v2325_v28 = vrot.slane %v506_v18, %v2173_v45  ;;  %v2343_v3 = vrot.slane %v558_v51, %v2164_v33  ;;  %v1161_v13 = vmul.f32 %v2167_v40, %v2319_v23  ;;  %v106_v32 = vrot.slane %v105_v19, 4 }
  0x93   :  { %v2337_v21 = vrot.slane %v532_v4, %v2164_v33  ;;  %v566_v63 = vcombine.low %v91_v27, %v99_v38  ;;  %v1454_v1 = vsel %vm1447_vm0, %v1353_v39, 0.0  ;;  %v2363_v61 = vmul.f32 %v2181_v50, %v2322_v56 }
  0x94   :  { %v113_v18 = vpop.permute.xlu1 %112  ;;  %v109_v31 = vpop.permute.xlu0 %108  ;;  %v1162_v48 = vmul.f32 %v2189_v55, %v2325_v28  ;;  %1455 = vadd.xlane.f32.xlu0 %v1454_v1 }
  0x95   :  { %v540_v36 = vcombine.low %v2334_v0, %v2337_v21  ;;  %v2353_v47 = vrot.slane %v566_v63, %v2164_v33  ;;  %v114_v27 = vrot.slane %v113_v18, 4  ;;  %v600_v51 = vcombine.low %v105_v19, %v113_v18 }
  0x96   :  { %v110_v38 = vrot.slane %v109_v31, 4  ;;  %v592_v4 = vcombine.low %v2073_v5, %v109_v31  ;;  %v1354_v39 = vcombine.low %v1161_v13, %v1162_v48 }
  0x97   :  { %v574_v15 = vcombine.low %v2343_v3, %v2353_v47  ;;  %v634_v59 = vcombine.low %v106_v32, %v114_v27  ;;  %v2359_v42 = vrot.slane %v540_v36, %v2173_v45  ;;  %v2366_v63 = vrot.slane %v600_v51, %v2164_v33 }
  0x98   :  { %v2369_v19 = vrot.slane %v592_v4, %v2164_v33  ;;  %v626_v18 = vcombine.low %v102_v25, %v110_v38  ;;  %v124_v31 = vpop.permute.xlu1 %123  ;;  %v120_v1 = vpop.permute.xlu0 %119  ;;  %v1457_v13 = vsel %vm1447_vm0, %v1354_v39, 0.0  ;;  %v1207_v36 = vmul.f32 %v2181_v50, %v2328_v37 }
  0x99   :  { %v2375_v48 = vrot.slane %v634_v59, %v2164_v33  ;;  %v125_v32 = vrot.slane %v124_v31, 4  ;;  %1458 = vadd.xlane.f32.xlu1 %v1457_v13  ;;  %v2381_v27 = vmul.f32 %v2202_v14, %v2331_v60  ;;  %v2389_v51 = vrot.slane %v574_v15, %v2173_v45 }
  0x9a   :  { %v608_v5 = vcombine.low %v2369_v19, %v2366_v63  ;;  %v2386_v25 = vrot.slane %v626_v18, %v2164_v33  ;;  %v1208_v59 = vmul.f32 %v2202_v14, %v2340_v12  ;;  %v660_v39 = vcombine.low %v2086_v6, %v124_v31 }
  0x9b   :  { %3133 = vst [vmem:[#allocation11_spill] sm:$0xff] %v2389_v51  ;;  %v694_v13 = vcombine.low %v117_v34, %v125_v32  ;;  %v1163_v44 = vmul.f32 %v2167_v40, %v2359_v42  ;;  %v1164_v17 = vmul.f32 %v2189_v55, %v2389_v51  ;;  %v121_v4 = vrot.slane %v120_v1, 4 }
  0x9c   :  { %v642_v18 = vcombine.low %v2386_v25, %v2375_v48  ;;  %v135_v53 = vpop.permute.xlu1 %134  ;;  %v128_v15 = vpop.permute.xlu0 %127  ;;  %v2407_v38 = vrot.slane %v608_v5, %v2173_v45  ;;  %v1376_v9 = vcombine.low %v1207_v36, %v1208_v59  ;;  %v2417_v8 = vrot.slane %v660_v39, %v2164_v33 }
  0x9d   :  { %v129_v6 = vrot.slane %v128_v15, 4  ;;  %v668_v34 = vcombine.low %v120_v1, %v128_v15  ;;  %v1355_v11 = vcombine.low %v1163_v44, %v1164_v17  ;;  %v1375_v31 = vcombine.low %v2363_v61, %v2381_v27 }
  0x9e   :  { %3134 = vst [vmem:[#allocation12_spill] sm:$0xff] %v2407_v38  ;;  %v2414_v10 = vrot.slane %v642_v18, %v2173_v45  ;;  %v2425_v1 = vrot.slane %v694_v13, %v2164_v33  ;;  %v1165_v44 = vmul.f32 %v2167_v40, %v2407_v38  ;;  %v136_v59 = vrot.slane %v135_v53, 4 }
  0x9f   :  { %v2420_v5 = vrot.slane %v668_v34, %v2164_v33  ;;  %v702_v30 = vcombine.low %v121_v4, %v129_v6  ;;  %v1460_v17 = vsel %vm1447_vm0, %v1355_v11, 0.0 }
  0xa0   :  { %3135 = vst [vmem:[#allocation13_spill] sm:$0xff] %v2414_v10  ;;  %v143_v15 = vpop.permute.xlu1 %142  ;;  %v139_v32 = vpop.permute.xlu0 %138  ;;  %v1166_v36 = vmul.f32 %v2189_v55, %v2414_v10  ;;  %1461 = vadd.xlane.f32.xlu0 %v1460_v17  ;;  %v2000_v10 = vmov 0.0  }
  0xa1   :  { %v676_v4 = vcombine.low %v2417_v8, %v2420_v5  ;;  %v2435_v39 = vrot.slane %v702_v30, %v2164_v33  ;;  %v144_v61 = vrot.slane %v143_v15, 4  ;;  %v736_v27 = vcombine.low %v135_v53, %v143_v15 }
  0xa2   :  { %v140_v13 = vrot.slane %v139_v32, 4  ;;  %v728_v18 = vcombine.low %v2095_v7, %v139_v32  ;;  %v1356_v11 = vcombine.low %v1165_v44, %v1166_v36  ;;  %v318_v51 = vcombine.high %v2225_v29, %v2000_v10 }
  0xa3   :  { %v710_v6 = vcombine.low %v2425_v1, %v2435_v39  ;;  %v770_v34 = vcombine.low %v136_v59, %v144_v61  ;;  %v2441_v38 = vrot.slane %v676_v4, %v2173_v45  ;;  %v2446_v30 = vrot.slane %v736_v27, %v2164_v33 }
  0xa4   :  { %v2449_v53 = vrot.slane %v728_v18, %v2164_v33  ;;  %v3136_v32 = vrot.slane %v2095_v7, 4  ;;  %v1463_v17 = vsel %vm1447_vm0, %v1356_v11, 0.0  ;;  %v284_v29 = vcombine.high %v2213_v22, %v2000_v10 }
  0xa5   :  { %v2455_v44 = vrot.slane %v770_v34, %v2164_v33  ;;  %1464 = vadd.xlane.f32.xlu1 %v1463_v17  ;;  %v2458_v36 = vrot.slane %v710_v6, %v2173_v45  ;;  %v386_v59 = vcombine.high %v2246_v49, %v2000_v10  ;;  %v1530_v27 = vsel %vm1447_vm0, %v1376_v9, 0.0 }
  0xa6   :  { %v762_v15 = vcombine.low %v3136_v32, %v140_v13  ;;  %v744_v7 = vcombine.low %v2449_v53, %v2446_v30  ;;  %v1167_v13 = vmul.f32 %v2167_v40, %v2441_v38  ;;  %v1181_v18 = vmul.f32 %v2233_v35, %v318_v51 }
  0xa7   :  { %3137 = vst [vmem:[#allocation14_spill] sm:$0xff] %v2455_v44  ;;  %v1168_v22 = vmul.f32 %v2189_v55, %v2458_v36  ;;  %v352_v49 = vcombine.high %v2242_v2, %v2000_v10  ;;  %v1183_v51 = vmul.f32 %v2233_v35, %v386_v59  ;;  %v454_v2 = vcombine.high %v2304_v26, %v2000_v10 }
  0xa8   :  { %v2469_v61 = vrot.slane %v762_v15, %v2164_v33  ;;  %v2486_v34 = vrot.slane %v744_v7, %v2173_v45  ;;  %v1180_v15 = vmul.f32 %v2204_v16, %v284_v29  ;;  %v1527_v6 = vsel %vm1447_vm0, %v1375_v31, 0.0 }
  0xa9   :  { %v1357_v32 = vcombine.low %v1167_v13, %v1168_v22  ;;  %v420_v7 = vcombine.high %v2277_v41, %v2000_v10  ;;  %v1182_v29 = vmul.f32 %v2204_v16, %v352_v49  ;;  %v522_v59 = vcombine.high %v2325_v28, %v2000_v10 }
  0xaa   :  { %3138 = vst [vmem:[#allocation15_spill] sm:$0xff] %v2469_v61  ;;  %v778_v9 = vcombine.low %v2469_v61, %v2455_v44  ;;  %v1363_v22 = vcombine.low %v1180_v15, %v1181_v18  ;;  %v1169_v31 = vmul.f32 %v2167_v40, %v2486_v34  ;;  %v1185_v28 = vmul.f32 %v2233_v35, %v454_v2 }
  0xab   :  { %v1466_v13 = vsel %vm1447_vm0, %v1357_v32, 0.0  ;;  %v150_v32 = vpop.permute.xlu0 %149  ;;  %v1364_v49 = vcombine.low %v1182_v29, %v1183_v51  ;;  %v488_v15 = vcombine.high %v2319_v23, %v2000_v10  ;;  %v3140_v17 = vcombine.high %v2261_v62, %v2271_v24 }
  0xac   :  { %v2495_v4 = vrot.slane %v778_v9, %v2173_v45  ;;  %1467 = vadd.xlane.f32.xlu0 %v1466_v13  ;;  %v3139_v13 = vcombine.high %v2254_v57, %v2257_v58  ;;  %v387_v18 = vcombine.high %v2340_v12, %v2000_v10  ;;  %v1488_v51 = vsel %vm1447_vm0, %v1363_v22, 0.0 }
  0xad   :  { %v453_v11 = vrot.slane %v3140_v17, %v2173_v45  ;;  %v1184_v2 = vmul.f32 %v2204_v16, %v420_v7  ;;  %v1187_v23 = vmul.f32 %v2233_v35, %v522_v59  ;;  %v319_v29 = vcombine.high %v2331_v60, %v2000_v10 }
  0xae   :  { %v1170_v41 = vmul.f32 %v2189_v55, %v2495_v4  ;;  %v419_v9 = vrot.slane %v3139_v13, %v2173_v45  ;;  %v353_v62 = vcombine.high %v2328_v37, %v2000_v10  ;;  %v285_v24 = vcombine.high %v2322_v56, %v2000_v10  ;;  %v3144_v13 = vld [vmem:[#allocation10_spill] sm:$0xff] }
  0xaf   :  { %v1491_v12 = vsel %vm1447_vm0, %v1364_v49, 0.0  ;;  %v1365_v17 = vcombine.low %v1184_v2, %v1185_v28  ;;  %v1186_v7 = vmul.f32 %v2204_v16, %v488_v15  ;;  %v3141_v60 = vcombine.high %v2301_v54, %v2294_v20  ;;  %v3143_v20 = vld [vmem:[#allocation11_spill] sm:$0xff] }
  0xb0   :  { %v1358_v26 = vcombine.low %v1169_v31, %v1170_v41  ;;  %v154_v31 = vpop.permute.xlu1 %153  ;;  %1531 = vadd.xlane.f32.xlu0 %v1530_v27  ;;  %v1209_v59 = vmul.f32 %v2181_v50, %v419_v9  ;;  %v1210_v27 = vmul.f32 %v2202_v14, %v453_v11  ;;  %v1233_v37 = vmul.f32 %v2250_v52, %v387_v18  ;;  %v158_v41 = vpop.permute.xlu0 %157 }
  0xb1   :  { %v521_v22 = vrot.slane %v3141_v60, %v2173_v45  ;;  %v3142_v56 = vcombine.high %v2284_v46, %v2281_v43  ;;  %v1366_v49 = vcombine.low %v1186_v7, %v1187_v23  ;;  %v1231_v28 = vmul.f32 %v2250_v52, %v319_v29  ;;  %v3145_v46 = vld [vmem:[#allocation5_spill] sm:$0xff] }
  0xb2   :  { %v1469_v58 = vsel %vm1447_vm0, %v1358_v26, 0.0  ;;  %v556_v15 = vcombine.high %v2359_v42, %v2000_v10  ;;  %v590_v54 = vcombine.high %v3143_v20, %v2000_v10  ;;  %v1232_v2 = vmul.f32 %v3144_v13, %v353_v62 }
  0xb3   :  { %1470 = vadd.xlane.f32.xlu1 %v1469_v58  ;;  %v487_v26 = vrot.slane %v3142_v56, %v2173_v45  ;;  %v1230_v18 = vmul.f32 %v3144_v13, %v285_v24  ;;  %v1212_v58 = vmul.f32 %v2202_v14, %v521_v22  ;;  %v155_v60 = vrot.slane %v154_v31, 4 }
  0xb4   :  { %1489 = vadd.xlane.f32.xlu0 %v1488_v51  ;;  %v151_v43 = vrot.slane %v150_v32, 4  ;;  %v796_v23 = vcombine.low %v3145_v46, %v154_v31  ;;  %v159_v7 = vrot.slane %v158_v41, 4  ;;  %v804_v29 = vcombine.low %v150_v32, %v158_v41  ;;  %v2561_v56 = vpop.permute.xlu1 %164  ;;  %v3146_v51 = vld [vmem:[#allocation13_spill] sm:$0xff] }
  0xb5   :  { %v1377_v42 = vcombine.low %v1209_v59, %v1210_v27  ;;  %v1388_v57 = vcombine.low %v1232_v2, %v1233_v37  ;;  %v1211_v20 = vmul.f32 %v2181_v50, %v487_v26  ;;  %v658_v62 = vcombine.high %v3146_v51, %v2000_v10  ;;  %v3148_v59 = vld [vmem:[#allocation12_spill] sm:$0xff] }
  0xb6   :  { %v1494_v24 = vsel %vm1447_vm0, %v1365_v17, 0.0  ;;  %v1387_v44 = vcombine.low %v1230_v18, %v1231_v28  ;;  %v1188_v61 = vmul.f32 %v2204_v16, %v556_v15  ;;  %v3147_v32 = vrot.slane %v3145_v46, 4 }
  0xb7   :  { %1528 = vadd.xlane.f32.xlu1 %v1527_v6  ;;  %v1189_v6 = vmul.f32 %v2233_v35, %v590_v54  ;;  %v1378_v31 = vcombine.low %v1211_v20, %v1212_v58  ;;  %v624_v27 = vcombine.high %v3148_v59, %v2000_v10  ;;  %v455_v37 = vcombine.high %v453_v11, %v2000_v10  ;;  %v169_v20 = vpop.permute.xlu0 %168 }
  0xb8   :  { %1495 = vadd.xlane.f32.xlu0 %v1494_v24  ;;  %v830_v41 = vcombine.low %v3147_v32, %v155_v60  ;;  %v2575_v2 = vrot.slane %v796_v23, %v2164_v33  ;;  %v2578_v17 = vrot.slane %v804_v29, %v2164_v33  ;;  %v838_v28 = vcombine.low %v151_v43, %v159_v7  ;;  %v173_v29 = vpop.permute.xlu1 %172 }
  0xb9   :  { %v421_v15 = vcombine.high %v419_v9, %v2000_v10  ;;  %v1497_v54 = vsel %vm1447_vm0, %v1366_v49, 0.0  ;;  %v1533_v18 = vsel %vm1447_vm0, %v1377_v42, 0.0  ;;  %v1569_v58 = vsel %vm1447_vm0, %v1388_v57, 0.0 }
  0xba   :  { %v1191_v60 = vmul.f32 %v2233_v35, %v658_v62  ;;  %v1367_v46 = vcombine.low %v1188_v61, %v1189_v6  ;;  %v1235_v11 = vmul.f32 %v2250_v52, %v455_v37  ;;  %v523_v23 = vcombine.high %v521_v22, %v2000_v10 }
  0xbb   :  { %1492 = vadd.xlane.f32.xlu1 %v1491_v12  ;;  %v489_v12 = vcombine.high %v487_v26, %v2000_v10  ;;  %v1566_v9 = vsel %vm1447_vm0, %v1387_v44, 0.0  ;;  %v1536_v49 = vsel %vm1447_vm0, %v1378_v31, 0.0  ;;  %v2591_v43 = vrot.slane %v830_v41, %v2164_v33 }
  0xbc   :  { %1534 = vadd.xlane.f32.xlu0 %v1533_v18  ;;  %v1190_v57 = vmul.f32 %v2204_v16, %v624_v27  ;;  %v812_v61 = vcombine.low %v2575_v2, %v2578_v17  ;;  %v2597_v26 = vrot.slane %v838_v28, %v2164_v33  ;;  %v1234_v22 = vmul.f32 %v3144_v13, %v421_v15 }
  0xbd   :  { %v1237_v7 = vmul.f32 %v2250_v52, %v523_v23  ;;  %v166_v44 = vrot.slane %v2561_v56, 4  ;;  %v3149_v51 = vcombine.high %v2343_v3, %v2353_v47  ;;  %v174_v24 = vrot.slane %v173_v29, 4  ;;  %v3151_v3 = vld [vmem:[#allocation6_spill] sm:$0xff] }
  0xbe   :  { %v1368_v42 = vcombine.low %v1190_v57, %v1191_v60  ;;  %v1500_v6 = vsel %vm1447_vm0, %v1367_v46, 0.0  ;;  %v1389_v31 = vcombine.low %v1234_v22, %v1235_v11  ;;  %v1236_v32 = vmul.f32 %v3144_v13, %v489_v12  ;;  %v184_v12 = vpop.permute.xlu1 %183 }
  0xbf   :  { %1498 = vadd.xlane.f32.xlu1 %v1497_v54  ;;  %v589_v62 = vrot.slane %v3149_v51, %v2173_v45  ;;  %v3150_v41 = vcombine.high %v2334_v0, %v2337_v21  ;;  %v813_v27 = vcombine.high %v2575_v2, %v2578_v17  ;;  %v872_v37 = vcombine.low %v2561_v56, %v173_v29 }
  0xc0   :  { %1570 = vadd.xlane.f32.xlu0 %v1569_v58  ;;  %v170_v28 = vrot.slane %v169_v20, 4  ;;  %v864_v47 = vcombine.low %v3151_v3, %v169_v20  ;;  %v2617_v15 = vrot.slane %v812_v61, %v2173_v45  ;;  %v846_v54 = vcombine.low %v2591_v43, %v2597_v26  ;;  %v180_v58 = vpop.permute.xlu0 %179 }
  0xc1   :  { %v555_v59 = vrot.slane %v3150_v41, %v2173_v45  ;;  %v1390_v18 = vcombine.low %v1236_v32, %v1237_v7  ;;  %v3152_v0 = vcombine.high %v2386_v25, %v2375_v48  ;;  %v847_v56 = vcombine.high %v2591_v43, %v2597_v26 }
  0xc2   :  { %v1503_v60 = vsel %vm1447_vm0, %v1368_v42, 0.0  ;;  %v1214_v46 = vmul.f32 %v2202_v14, %v589_v62  ;;  %v906_v11 = vcombine.low %v166_v44, %v174_v24  ;;  %v1572_v23 = vsel %vm1447_vm0, %v1389_v31, 0.0 }
  0xc3   :  { %1567 = vadd.xlane.f32.xlu1 %v1566_v9  ;;  %v657_v21 = vrot.slane %v3152_v0, %v2173_v45  ;;  %v1213_v29 = vmul.f32 %v2181_v50, %v555_v59  ;;  %v3153_v20 = vcombine.high %v2369_v19, %v2366_v63  ;;  %v726_v25 = vcombine.high %v2458_v36, %v2000_v10 }
  0xc4   :  { %1537 = vadd.xlane.f32.xlu0 %v1536_v49  ;;  %v2638_v9 = vrot.slane %v872_v37, %v2164_v33  ;;  %v2641_v57 = vrot.slane %v864_v47, %v2164_v33  ;;  %v3154_v61 = vrot.slane %v3151_v3, 4  ;;  %v692_v7 = vcombine.high %v2441_v38, %v2000_v10  ;;  %v188_v41 = vpop.permute.xlu0 %187  ;;  %v3155_v47 = vld [vmem:[#allocation7_spill] sm:$0xff] }
  0xc5   :  { %v623_v48 = vrot.slane %v3153_v20, %v2173_v45  ;;  %v1575_v63 = vsel %vm1447_vm0, %v1390_v18, 0.0  ;;  %v1216_v19 = vmul.f32 %v2202_v14, %v657_v21  ;;  %v760_v36 = vcombine.high %v2486_v34, %v2000_v10 }
  0xc6   :  { %v898_v22 = vcombine.low %v3154_v61, %v170_v28  ;;  %v794_v49 = vcombine.high %v2495_v4, %v2000_v10  ;;  %v1379_v42 = vcombine.low %v1213_v29, %v1214_v46  ;;  %v2654_v44 = vrot.slane %v906_v11, %v2164_v33 }
  0xc7   :  { %1501 = vadd.xlane.f32.xlu1 %v1500_v6  ;;  %v557_v51 = vcombine.high %v555_v59, %v2000_v10  ;;  %v591_v24 = vcombine.high %v589_v62, %v2000_v10  ;;  %v1215_v38 = vmul.f32 %v2181_v50, %v623_v48  ;;  %v1193_v6 = vmul.f32 %v2233_v35, %v726_v25  ;;  %v2668_v62 = vpop.permute.xlu1 %194 }
  0xc8   :  { %v1195_v31 = vmul.f32 %v2233_v35, %v794_v49  ;;  %v185_v32 = vrot.slane %v184_v12, 4  ;;  %1504 = vadd.xlane.f32.xlu0 %v1503_v60  ;;  %v880_v4 = vcombine.low %v2641_v57, %v2638_v9  ;;  %v2664_v34 = vrot.slane %v898_v22, %v2164_v33 }
  0xc9   :  { %v1192_v37 = vmul.f32 %v2204_v16, %v692_v7  ;;  %v1239_v59 = vmul.f32 %v2250_v52, %v591_v24  ;;  %v1380_v28 = vcombine.low %v1215_v38, %v1216_v19  ;;  %v1194_v3 = vmul.f32 %v2204_v16, %v760_v36 }
  0xca   :  { %v932_v18 = vcombine.low %v3155_v47, %v184_v12  ;;  %v940_v0 = vcombine.low %v180_v58, %v188_v41  ;;  %v181_v60 = vrot.slane %v180_v58, 4  ;;  %v1238_v46 = vmul.f32 %v3144_v13, %v557_v51 }
  0xcb   :  { %1573 = vadd.xlane.f32.xlu1 %v1572_v23  ;;  %v189_v11 = vrot.slane %v188_v41, 4  ;;  %v659_v29 = vcombine.high %v657_v21, %v2000_v10  ;;  %v1539_v20 = vsel %vm1447_vm0, %v1379_v42, 0.0  ;;  %v1369_v25 = vcombine.low %v1192_v37, %v1193_v6 }
  0xcc   :  { %v1370_v61 = vcombine.low %v1194_v3, %v1195_v31  ;;  %v3156_v22 = vrot.slane %v3155_v47, 4  ;;  %1576 = vadd.xlane.f32.xlu0 %v1575_v63  ;;  %v1391_v23 = vcombine.low %v1238_v46, %v1239_v59  ;;  %v625_v19 = vcombine.high %v623_v48, %v2000_v10 }
  0xcd   :  { %v3157_v58 = vcombine.high %v2417_v8, %v2420_v5  ;;  %v3158_v21 = vcombine.high %v2425_v1, %v2435_v39  ;;  %v2687_v49 = vrot.slane %v880_v4, %v2173_v45  ;;  %v1542_v42 = vsel %vm1447_vm0, %v1380_v28, 0.0  ;;  %v203_v39 = vpop.permute.xlu1 %202 }
  0xce   :  { %v966_v7 = vcombine.low %v3156_v22, %v185_v32  ;;  %v2691_v63 = vrot.slane %v932_v18, %v2164_v33  ;;  %v2694_v48 = vrot.slane %v940_v0, %v2164_v33  ;;  %v974_v51 = vcombine.low %v181_v60, %v189_v11  ;;  %v199_v32 = vpop.permute.xlu0 %198  ;;  %v3159_v22 = vld [vmem:[#allocation8_spill] sm:$0xff] }
  0xcf   :  { %v691_v12 = vrot.slane %v3157_v58, %v2173_v45  ;;  %v725_v36 = vrot.slane %v3158_v21, %v2173_v45  ;;  %1540 = vadd.xlane.f32.xlu1 %v1539_v20  ;;  %v1241_v8 = vmul.f32 %v2250_v52, %v659_v29  ;;  %v828_v1 = vcombine.high %v2617_v15, %v2000_v10 }
  0xd0   :  { %v1506_v24 = vsel %vm1447_vm0, %v1369_v25, 0.0  ;;  %v1509_v38 = vsel %vm1447_vm0, %v1370_v61, 0.0  ;;  %v2703_v6 = vrot.slane %v966_v7, %v2164_v33  ;;  %v854_v31 = vrot.slane %v846_v54, %v2173_v45  ;;  %1543 = vadd.xlane.f32.xlu0 %v1542_v42 }
  0xd1   :  { %v1218_v5 = vmul.f32 %v2202_v14, %v725_v36  ;;  %v1578_v41 = vsel %vm1447_vm0, %v1391_v23, 0.0  ;;  %v1240_v4 = vmul.f32 %v3144_v13, %v625_v19  ;;  %v1217_v37 = vmul.f32 %v2181_v50, %v691_v12 }
  0xd2   :  { %v196_v59 = vrot.slane %v2668_v62, 4  ;;  %v948_v28 = vcombine.low %v2691_v63, %v2694_v48  ;;  %v862_v3 = vcombine.high %v854_v31, %v2000_v10  ;;  %v1196_v47 = vmul.f32 %v2204_v16, %v828_v1 }
  0xd3   :  { %1507 = vadd.xlane.f32.xlu1 %v1506_v24  ;;  %v204_v18 = vrot.slane %v203_v39, 4  ;;  %v2718_v54 = vrot.slane %v974_v51, %v2164_v33  ;;  %v1392_v0 = vcombine.low %v1240_v4, %v1241_v8  ;;  %v1381_v60 = vcombine.low %v1217_v37, %v1218_v5  ;;  %v3162_v24 = vld [vmem:[#allocation15_spill] sm:$0xff] }
  0xd4   :  { %v200_v46 = vrot.slane %v199_v32, 4  ;;  %v1197_v11 = vmul.f32 %v2233_v35, %v862_v3  ;;  %v1171_v29 = vmul.f32 %v2167_v40, %v2617_v15  ;;  %v1172_v20 = vmul.f32 %v2189_v55, %v854_v31  ;;  %1510 = vadd.xlane.f32.xlu0 %v1509_v38  ;;  %v3163_v38 = vld [vmem:[#allocation14_spill] sm:$0xff] }
  0xd5   :  { %v1008_v25 = vcombine.low %v2668_v62, %v203_v39  ;;  %v1042_v61 = vcombine.low %v196_v59, %v204_v18  ;;  %v1000_v7 = vcombine.low %v3159_v22, %v199_v32  ;;  %v693_v23 = vcombine.high %v691_v12, %v2000_v10  ;;  %v244_v59 = vpop.permute.xlu0 %243 }
  0xd6   :  { %v727_v19 = vcombine.high %v725_v36, %v2000_v10  ;;  %v914_v58 = vcombine.low %v2664_v34, %v2654_v44  ;;  %v956_v21 = vrot.slane %v948_v28, %v2173_v45  ;;  %v1371_v42 = vcombine.low %v1196_v47, %v1197_v11 }
  0xd7   :  { %1579 = vadd.xlane.f32.xlu1 %v1578_v41  ;;  %v3160_v15 = vrot.slane %v3159_v22, 4  ;;  %v982_v62 = vcombine.low %v2703_v6, %v2718_v54  ;;  %v1581_v8 = vsel %vm1447_vm0, %v1392_v0, 0.0  ;;  %v3161_v12 = vcombine.high %v2449_v53, %v2446_v30 }
  0xd8   :  { %v1243_v5 = vmul.f32 %v2250_v52, %v727_v19  ;;  %v1545_v1 = vsel %vm1447_vm0, %v1381_v60, 0.0  ;;  %v1359_v39 = vcombine.low %v1171_v29, %v1172_v20  ;;  %v3164_v31 = vcombine.high %v3162_v24, %v3163_v38  ;;  %1582 = vadd.xlane.f32.xlu0 %v1581_v8 }
  0xd9   :  { %v1034_v51 = vcombine.low %v3160_v15, %v200_v46  ;;  %v759_v36 = vrot.slane %v3161_v12, %v2173_v45  ;;  %v896_v41 = vcombine.high %v2687_v49, %v2000_v10  ;;  %v2749_v4 = vrot.slane %v1008_v25, %v2164_v33  ;;  %v1971_v12 = vld [vmem:[%s3107_s1 + $0x60] sm:$0xf]  ;;  %s2001_s1 = smov [#allocation2]  }
  0xda   :  { %v793_v32 = vrot.slane %v3164_v31, %v2173_v45  ;;  %v2752_v37 = vrot.slane %v1042_v61, %v2164_v33  ;;  %v2755_v30 = vrot.slane %v1000_v7, %v2164_v33  ;;  %v1242_v53 = vmul.f32 %v3144_v13, %v693_v23  ;;  %s1954_s12 = sshll.u32 %s2001_s1, 4  ;;  %s1955_s12 = int_to_ptr.vmem [resolvable:$true] %s1954_s12 }
  0xdb   :  { %1546 = vadd.xlane.f32.xlu1 %v1545_v1  ;;  %v1512_v28 = vsel %vm1447_vm0, %v1371_v42, 0.0  ;;  %v2760_v3 = vrot.slane %v1034_v51, %v2164_v33  ;;  %v922_v18 = vrot.slane %v914_v58, %v2173_v45  ;;  %v1219_v60 = vmul.f32 %v2181_v50, %v759_v36  ;;  %v247_v51 = vpop.permute.xlu1 %246  ;;  %s1972_s14 = scalar_lea.vmem %s1955_s12, 64  ;;  %p1977_p1 = scmp.lt.s32.totalorder %s1955_s12, %s1955_s12 }
  0xdc   :  { %v1220_v47 = vmul.f32 %v2202_v14, %v793_v32  ;;  %v1393_v0 = vcombine.low %v1242_v53, %v1243_v5  ;;  %v761_v46 = vcombine.high %v759_v36, %v2000_v10  ;;  %v795_v11 = vcombine.high %v793_v32, %v2000_v10  ;;  %1513 = vadd.xlane.f32.xlu0 %v1512_v28  ;;  %p1973_p0 = scmp.ne.s32.totalorder %s1955_s12, %s1972_s14  ;;  %p1978_p2 = scmp.lt.s32.totalorder %s1972_s14, %s1972_s14 }
  0xdd   :  { %v930_v29 = vcombine.high %v922_v18, %v2000_v10  ;;  %v1198_v20 = vmul.f32 %v2204_v16, %v896_v41  ;;  %v1173_v25 = vmul.f32 %v2167_v40, %v2687_v49  ;;  %v1174_v61 = vmul.f32 %v2189_v55, %v922_v18 }
  0xde   :  { %v1472_v22 = vsel %vm1447_vm0, %v1359_v39, 0.0  ;;  %v1382_v7 = vcombine.low %v1219_v60, %v1220_v47  ;;  %v827_v23 = vrot.slane %v813_v27, %v2173_v45  ;;  %v861_v19 = vrot.slane %v847_v56, %v2173_v45  ;;  %v250_v27 = vpop.permute.xlu0 %249  ;;  %p1979_p3 = por %p1978_p2, %p1977_p1 }
  0xdf   :  { %v881_v58 = vcombine.high %v2641_v57, %v2638_v9  ;;  %v915_v49 = vcombine.high %v2664_v34, %v2654_v44  ;;  %1473 = vadd.xlane.f32.xlu1 %v1472_v22  ;;  %v1016_v42 = vcombine.low %v2755_v30, %v2749_v4  ;;  %v1199_v15 = vmul.f32 %v2233_v35, %v930_v29 }
  0xe0   :  { %v1050_v2 = vcombine.low %v2760_v3, %v2752_v37  ;;  %v1584_v17 = vsel %vm1447_vm0, %v1393_v0, 0.0  ;;  %v1244_v43 = vmul.f32 %v3144_v13, %v761_v46  ;;  %v1245_v26 = vmul.f32 %v2250_v52, %v795_v11  ;;  %p1980_p4 = pnand %p1979_p3, %p1973_p0 }
  0xe1   :  { %v1372_v56 = vcombine.low %v1198_v20, %v1199_v15  ;;  %v1360_v9 = vcombine.low %v1173_v25, %v1174_v61  ;;  %v964_v57 = vcombine.high %v956_v21, %v2000_v10  ;;  %v990_v44 = vrot.slane %v982_v62, %v2173_v45  ;;  %1585 = vadd.xlane.f32.xlu0 %v1584_v17 }
  0xe2   :  { %v1548_v34 = vsel %vm1447_vm0, %v1382_v7, 0.0  ;;  %v1221_v8 = vmul.f32 %v2181_v50, %v827_v23  ;;  %v1222_v5 = vmul.f32 %v2202_v14, %v861_v19  ;;  %v1068_v36 = vcombine.low %v1971_v12, %v247_v51 }
  0xe3   :  { %1549 = vadd.xlane.f32.xlu1 %v1548_v34  ;;  %v1076_v1 = vcombine.low %v244_v59, %v250_v27  ;;  %v998_v39 = vcombine.high %v990_v44, %v2000_v10  ;;  %v1175_v24 = vmul.f32 %v2167_v40, %v956_v21  ;;  %v1176_v62 = vmul.f32 %v2189_v55, %v990_v44 }
  0xe4   :  { %v1024_v38 = vrot.slane %v1016_v42, %v2173_v45  ;;  %v1394_v31 = vcombine.low %v1244_v43, %v1245_v26  ;;  %v829_v32 = vcombine.high %v827_v23, %v2000_v10  ;;  %v863_v41 = vcombine.high %v861_v19, %v2000_v10 }
  0xe5   :  { %v1515_v53 = vsel %vm1447_vm0, %v1372_v56, 0.0  ;;  %v1475_v28 = vsel %vm1447_vm0, %v1360_v9, 0.0  ;;  %v1200_v47 = vmul.f32 %v2204_v16, %v964_v57  ;;  %v1201_v59 = vmul.f32 %v2233_v35, %v998_v39 }
  0xe6   :  { %1516 = vadd.xlane.f32.xlu0 %v1515_v53  ;;  %v1383_v18 = vcombine.low %v1221_v8, %v1222_v5  ;;  %v895_v21 = vrot.slane %v881_v58, %v2173_v45  ;;  %v929_v0 = vrot.slane %v915_v49, %v2173_v45  ;;  %v1058_v60 = vrot.slane %v1050_v2, %v2173_v45 }
  0xe7   :  { %1476 = vadd.xlane.f32.xlu1 %v1475_v28  ;;  %v2815_v46 = vrot.slane %v1068_v36, %v2164_v33  ;;  %v2818_v11 = vrot.slane %v1076_v1, %v2164_v33  ;;  %v1361_v29 = vcombine.low %v1175_v24, %v1176_v62  ;;  %v1246_v20 = vmul.f32 %v3144_v13, %v829_v32 }
  0xe8   :  { %v1247_v25 = vmul.f32 %v2250_v52, %v863_v41  ;;  %v1032_v61 = vcombine.high %v1024_v38, %v2000_v10  ;;  %v1066_v22 = vcombine.high %v1058_v60, %v2000_v10  ;;  %v949_v7 = vcombine.high %v2691_v63, %v2694_v48 }
  0xe9   :  { %v1587_v23 = vsel %vm1447_vm0, %v1394_v31, 0.0  ;;  %v1373_v19 = vcombine.low %v1200_v47, %v1201_v59  ;;  %v983_v58 = vcombine.high %v2703_v6, %v2718_v54  ;;  %v1551_v33 = vsel %vm1447_vm0, %v1383_v18, 0.0 }
  0xea   :  { %1588 = vadd.xlane.f32.xlu0 %v1587_v23  ;;  %v1223_v49 = vmul.f32 %v2181_v50, %v895_v21  ;;  %v1224_v42 = vmul.f32 %v2202_v14, %v929_v0  ;;  %v1084_v15 = vcombine.low %v2815_v46, %v2818_v11  ;;  %v1478_v51 = vsel %vm1447_vm0, %v1361_v29, 0.0 }
  0xeb   :  { %1552 = vadd.xlane.f32.xlu1 %v1551_v33  ;;  %v1395_v63 = vcombine.low %v1246_v20, %v1247_v25  ;;  %v1202_v48 = vmul.f32 %v2204_v16, %v1032_v61  ;;  %v1203_v2 = vmul.f32 %v2233_v35, %v1066_v22  ;;  %v1518_v6 = vsel %vm1447_vm0, %v1373_v19, 0.0 }
  0xec   :  { %v1177_v54 = vmul.f32 %v2167_v40, %v1024_v38  ;;  %v897_v17 = vcombine.high %v895_v21, %v2000_v10  ;;  %v931_v43 = vcombine.high %v929_v0, %v2000_v10  ;;  %v1384_v26 = vcombine.low %v1223_v49, %v1224_v42 }
  0xed   :  { %v1178_v27 = vmul.f32 %v2189_v55, %v1058_v60  ;;  %v963_v56 = vrot.slane %v949_v7, %v2173_v45  ;;  %v997_v9 = vrot.slane %v983_v58, %v2173_v45  ;;  %v1017_v35 = vcombine.high %v2755_v30, %v2749_v4 }
  0xee   :  { %1519 = vadd.xlane.f32.xlu0 %v1518_v6  ;;  %v1051_v57 = vcombine.high %v2760_v3, %v2752_v37  ;;  %v1374_v44 = vcombine.low %v1202_v48, %v1203_v2  ;;  %v1590_v34 = vsel %vm1447_vm0, %v1395_v63, 0.0  ;;  %v1248_v8 = vmul.f32 %v3144_v13, %v897_v17 }
  0xef   :  { %1479 = vadd.xlane.f32.xlu1 %v1478_v51  ;;  %v1249_v5 = vmul.f32 %v2250_v52, %v931_v43  ;;  %v1092_v55 = vrot.slane %v1084_v15, %v2173_v45  ;;  %v1554_v12 = vsel %vm1447_vm0, %v1384_v26, 0.0  ;;  %v1362_v36 = vcombine.low %v1177_v54, %v1178_v27 }
  0xf0   :  { %v1225_v1 = vmul.f32 %v2181_v50, %v963_v56  ;;  %v1226_v4 = vmul.f32 %v2202_v14, %v997_v9  ;;  %v1521_v37 = vsel %vm1447_vm0, %v1374_v44, 0.0  ;;  %v965_v30 = vcombine.high %v963_v56, %v2000_v10 }
  0xf1   :  { %v999_v3 = vcombine.high %v997_v9, %v2000_v10  ;;  %v1396_v39 = vcombine.low %v1248_v8, %v1249_v5  ;;  %v1100_v24 = vcombine.high %v1092_v55, %v2000_v10  ;;  %v1031_v62 = vrot.slane %v1017_v35, %v2173_v45 }
  0xf2   :  { %1591 = vadd.xlane.f32.xlu0 %v1590_v34  ;;  %v1065_v38 = vrot.slane %v1051_v57, %v2173_v45  ;;  %v1481_v31 = vsel %vm1447_vm0, %v1362_v36, 0.0  ;;  %v1385_v32 = vcombine.low %v1225_v1, %v1226_v4  ;;  %v1085_v41 = vcombine.high %v2815_v46, %v2818_v11 }
  0xf3   :  { %1555 = vadd.xlane.f32.xlu1 %v1554_v12  ;;  %v1250_v53 = vmul.f32 %v3144_v13, %v965_v30  ;;  %v1251_v28 = vmul.f32 %v2250_v52, %v999_v3  ;;  %v1593_v47 = vsel %vm1447_vm0, %v1396_v39, 0.0  ;;  %v1204_v59 = vmul.f32 %v2204_v16, %v1100_v24 }
  0xf4   :  { %v1033_v18 = vcombine.high %v1031_v62, %v2000_v10  ;;  %v1067_v21 = vcombine.high %v1065_v38, %v2000_v10  ;;  %v1557_v0 = vsel %vm1447_vm0, %v1385_v32, 0.0  ;;  %v1179_v60 = vmul.f32 %v2167_v40, %v1092_v55 }
  0xf5   :  { %v1227_v29 = vmul.f32 %v2181_v50, %v1031_v62  ;;  %v1228_v46 = vmul.f32 %v2202_v14, %v1065_v38  ;;  %v1524_v11 = vsel %vm1484_vm1, %v1204_v59, 0.0  ;;  %v1397_v20 = vcombine.low %v1250_v53, %v1251_v28 }
  0xf6   :  { %1522 = vadd.xlane.f32.xlu0 %v1521_v37  ;;  %v1252_v16 = vmul.f32 %v3144_v13, %v1033_v18  ;;  %v1253_v25 = vmul.f32 %v2250_v52, %v1067_v21  ;;  %v1485_v61 = vsel %vm1484_vm1, %v1179_v60, 0.0  ;;  %v1099_v7 = vrot.slane %v1085_v41, %v2173_v45 }
  0xf7   :  { %1482 = vadd.xlane.f32.xlu1 %v1481_v31  ;;  %v1386_v22 = vcombine.low %v1227_v29, %v1228_v46  ;;  %v1596_v40 = vsel %vm1447_vm0, %v1397_v20, 0.0  ;;  %v3165_v42 = vlaneseq }
  0xf8   :  { %v1398_v23 = vcombine.low %v1252_v16, %v1253_v25  ;;  %v1229_v19 = vmul.f32 %v2181_v50, %v1099_v7  ;;  %v1101_v58 = vcombine.high %v1099_v7, %v2000_v10  ;;  %v3166_v50 = vld [vmem:[#allocation9_spill] sm:$0xff] }
  0xf9   :  { %v1560_v14 = vsel %vm1447_vm0, %v1386_v22, 0.0  ;;  %v2888_v15 = vand.u32 127, %v3165_v42 }
  0xfa   :  { %1594 = vadd.xlane.f32.xlu0 %v1593_v47  ;;  %v1599_v52 = vsel %vm1447_vm0, %v1398_v23, 0.0  ;;  %v1563_v33 = vsel %vm1484_vm1, %v1229_v19, 0.0  ;;  %v1254_v49 = vmul.f32 %v3144_v13, %v1101_v58  ;;  %vm1943_vm0 = vcmask 1043459  }
  0xfb   :  { %1558 = vadd.xlane.f32.xlu1 %v1557_v0  ;;  %v1663_v51 = vadd.s32 4294967288, %v2888_v15  ;;  %v2893_v10 = vsub.s32 %v2888_v15, %v3166_v50  ;;  %v1670_v54 = vadd.s32 4294967280, %v2888_v15  ;;  %v1677_v26 = vadd.s32 4294967272, %v2888_v15 }
  0xfc   :  { %v1602_v45 = vsel %vm1484_vm1, %v1254_v49, 0.0  ;;  %v1684_v34 = vadd.s32 4294967264, %v2888_v15  ;;  %v1691_v55 = vadd.s32 4294967256, %v2888_v15  ;;  %v1698_v30 = vadd.s32 4294967248, %v2888_v15 }
  0xfd   :  { %v2896_v63 = vsub.s32 %v1663_v51, %v3166_v50  ;;  %v2903_v43 = vsub.s32 %v1670_v54, %v3166_v50  ;;  %v2908_v9 = vsub.s32 %v1677_v26, %v3166_v50  ;;  %v1705_v62 = vadd.s32 4294967240, %v2888_v15 }
  0xfe   :  { %1525 = vadd.xlane.f32.xlu0 %v1524_v11  ;;  %v2915_v5 = vsub.s32 %v1684_v34, %v3166_v50  ;;  %v2920_v1 = vsub.s32 %v1691_v55, %v3166_v50  ;;  %v2927_v24 = vsub.s32 %v1698_v30, %v3166_v50  ;;  %v1726_v30 = vadd.s32 4294967216, %v2888_v15 }
  0xff   :  { %1486 = vadd.xlane.f32.xlu1 %v1485_v61  ;;  %v2932_v32 = vsub.s32 %v1705_v62, %v3166_v50  ;;  %vm1946_vm1 = vcmask 814080  }
 0x102   :  { %1597 = vadd.xlane.f32.xlu0 %v1596_v40 }
 0x103   :  { %1561 = vadd.xlane.f32.xlu1 %v1560_v14 }
 0x106   :  { %1600 = vadd.xlane.f32.xlu0 %v1599_v52 }
 0x107   :  { %1564 = vadd.xlane.f32.xlu1 %v1563_v33 }
 0x10b   :  { %1603 = vadd.xlane.f32.xlu1 %v1602_v45 }
 0x111   :  { %v1450_v48 = vpop.xlane.xlu1 %1449 }
 0x112   :  { %v1662_v13 = vrot.slane %v1450_v48, %v2893_v10 }
 0x116   :  { %v1453_v2 = vpop.xlane.xlu0 %1452 }
 0x117   :  { %v1667_v6 = vrot.slane %v1453_v2, %v2896_v63 }
 0x119   :  { %v1669_v17 = vsel %vm1668_vm2, %v1667_v6, %v1662_v13 }
 0x11d   :  { %v1456_v27 = vpop.xlane.xlu0 %1455 }
 0x11e   :  { %v1674_v56 = vrot.slane %v1456_v27, %v2903_v43 }
 0x120   :  { %v1676_v35 = vsel %vm1675_vm3, %v1674_v56, %v1669_v17 }
 0x122   :  { %v1459_v57 = vpop.xlane.xlu1 %1458 }
 0x123   :  { %v1681_v44 = vrot.slane %v1459_v57, %v2908_v9 }
 0x125   :  { %v1683_v8 = vsel %vm1682_vm4, %v1681_v44, %v1676_v35 }
 0x129   :  { %v1462_v12 = vpop.xlane.xlu0 %1461 }
 0x12a   :  { %v1688_v36 = vrot.slane %v1462_v12, %v2915_v5 }
 0x12c   :  { %v1690_v4 = vsel %vm1689_vm5, %v1688_v36, %v1683_v8  ;;  %v1712_v36 = vadd.s32 4294967232, %v2888_v15 }
 0x12e   :  { %v1465_v37 = vpop.xlane.xlu1 %1464 }
 0x12f   :  { %v1695_v3 = vrot.slane %v1465_v37, %v2920_v1 }
 0x131   :  { %v1697_v39 = vsel %vm1696_vm6, %v1695_v3, %v1690_v4  ;;  %v1719_v4 = vadd.s32 4294967224, %v2888_v15 }
 0x135   :  { %v1468_v38 = vpop.xlane.xlu0 %1467 }
 0x136   :  { %v1702_v31 = vrot.slane %v1468_v38, %v2927_v24  ;;  %v2991_v38 = vsub.s32 %v1712_v36, %v3166_v50 }
 0x138   :  { %v1704_v41 = vsel %vm1703_vm7, %v1702_v31, %v1697_v39  ;;  %v1733_v39 = vadd.s32 4294967208, %v2888_v15 }
 0x139   :  { %v1532_v53 = vpop.xlane.xlu0 %1531 }
 0x13a   :  { %v1818_v0 = vrot.slane %v1532_v53, %v2896_v63 }
 0x13c   :  { %v1471_v28 = vpop.xlane.xlu1 %1470 }
 0x13d   :  { %v1709_v47 = vrot.slane %v1471_v28, %v2932_v32  ;;  %v1490_v18 = vpop.xlane.xlu0 %1489  ;;  %v1740_v28 = vadd.s32 4294967200, %v2888_v15 }
 0x13e   :  { %v1750_v16 = vrot.slane %v1490_v18, %v2893_v10  ;;  %v3000_v18 = vsub.s32 %v1726_v30, %v3166_v50 }
 0x13f   :  { %v2937_v59 = vsel %vm1710_vm8, %v1709_v47, %v1704_v41  ;;  %v2995_v41 = vsub.s32 %v1719_v4, %v3166_v50 }
 0x140   :  { %v1529_v21 = vpop.xlane.xlu1 %1528 }
 0x141   :  { %v1814_v60 = vrot.slane %v1529_v21, %v2893_v10  ;;  %v1496_v46 = vpop.xlane.xlu0 %1495  ;;  %v3003_v21 = vsub.s32 %v1733_v39, %v3166_v50 }
 0x142   :  { %v1759_v20 = vrot.slane %v1496_v46, %v2903_v43 }
 0x143   :  { %v2942_v29 = vsel %vm1668_vm2, %v1818_v0, %v1814_v60 }
 0x144   :  { %v1493_v11 = vpop.xlane.xlu1 %1492 }
 0x145   :  { %v1754_v25 = vrot.slane %v1493_v11, %v2896_v63  ;;  %v2948_v22 = vpop.xlane.xlu0 %1534 }
 0x146   :  { %v1823_v60 = vrot.slane %v2948_v22, %v2903_v43 }
 0x147   :  { %v1755_v61 = vsel %vm1668_vm2, %v1754_v25, %v1750_v16 }
 0x148   :  { %v1760_v7 = vsel %vm1675_vm3, %v1759_v20, %v1755_v61  ;;  %v1499_v40 = vpop.xlane.xlu1 %1498 }
 0x149   :  { %v1764_v23 = vrot.slane %v1499_v40, %v2908_v9  ;;  %v2953_v19 = vpop.xlane.xlu0 %1570  ;;  %v3022_v40 = vsub.s32 %v1740_v28, %v3166_v50 }
 0x14a   :  { %v1882_v46 = vrot.slane %v2953_v19, %v2896_v63 }
 0x14b   :  { %v1765_v14 = vsel %vm1682_vm4, %v1764_v23, %v1760_v7 }
 0x14c   :  { %v2955_v58 = vpop.xlane.xlu1 %1567 }
 0x14d   :  { %v2957_v52 = vpop.xlane.xlu0 %1537  ;;  %v1878_v15 = vrot.slane %v2955_v58, %v2893_v10  ;;  %v1824_v58 = vsel %vm1675_vm3, %v1823_v60, %v2942_v29 }
 0x14e   :  { %v1828_v20 = vrot.slane %v2957_v52, %v2908_v9 }
 0x14f   :  { %v1883_v50 = vsel %vm1668_vm2, %v1882_v46, %v1878_v15 }
 0x150   :  { %v1502_v33 = vpop.xlane.xlu1 %1501 }
 0x151   :  { %v1505_v49 = vpop.xlane.xlu0 %1504  ;;  %v1769_v62 = vrot.slane %v1502_v33, %v2915_v5 }
 0x152   :  { %v1774_v31 = vrot.slane %v1505_v49, %v2920_v1 }
 0x153   :  { %v1770_v16 = vsel %vm1689_vm5, %v1769_v62, %v1765_v14 }
 0x154   :  { %v2959_v45 = vpop.xlane.xlu1 %1573  ;;  %v1775_v61 = vsel %vm1696_vm6, %v1774_v31, %v1770_v16 }
 0x155   :  { %v2961_v42 = vpop.xlane.xlu0 %1576 }
 0x156   :  { %v1892_v62 = vrot.slane %v2961_v42, %v2908_v9 }
 0x158   :  { %v2963_v51 = vpop.xlane.xlu1 %1540 }
 0x159   :  { %v2965_v48 = vpop.xlane.xlu0 %1543  ;;  %v1833_v29 = vrot.slane %v2963_v51, %v2915_v5 }
 0x15c   :  { %v1508_v2 = vpop.xlane.xlu1 %1507 }
 0x15d   :  { %v1511_v13 = vpop.xlane.xlu0 %1510  ;;  %v1779_v47 = vrot.slane %v1508_v2, %v2927_v24  ;;  %v1829_v2 = vsel %vm1682_vm4, %v1828_v20, %v1824_v58 }
 0x15e   :  { %v1784_v11 = vrot.slane %v1511_v13, %v2932_v32  ;;  %v1834_v28 = vsel %vm1689_vm5, %v1833_v29, %v1829_v2 }
 0x15f   :  { %v1780_v10 = vsel %vm1703_vm7, %v1779_v47, %v1775_v61 }
 0x160   :  { %v2967_v6 = vpop.xlane.xlu1 %1579  ;;  %v1785_v52 = vsel %vm1710_vm8, %v1784_v11, %v1780_v10 }
 0x161   :  { %v2969_v54 = vpop.xlane.xlu0 %1582 }
 0x162   :  { %v1902_v42 = vrot.slane %v2969_v54, %v2920_v1 }
 0x164   :  { %v2971_v17 = vpop.xlane.xlu1 %1546 }
 0x165   :  { %v1514_v26 = vpop.xlane.xlu0 %1513 }
 0x166   :  { %v1789_v25 = vrot.slane %v1514_v26, %v2991_v38 }
 0x168   :  { %v1474_v27 = vpop.xlane.xlu1 %1473  ;;  %v1790_v13 = vsel %vm1717_vm9, %v1789_v25, %v1785_v52 }
 0x169   :  { %v1716_v22 = vrot.slane %v1474_v27, %v2991_v38  ;;  %v1887_v27 = vrot.slane %v2959_v45, %v2903_v43  ;;  %v1843_v43 = vrot.slane %v2971_v17, %v2927_v24  ;;  %v1897_v17 = vrot.slane %v2967_v6, %v2915_v5 }
 0x16a   :  { %v2973_v56 = vpop.xlane.xlu0 %1585 }
 0x16b   :  { %v1888_v15 = vsel %vm1675_vm3, %v1887_v27, %v1883_v50  ;;  %v1907_v6 = vrot.slane %v2973_v56, %v2927_v24 }
 0x16c   :  { %v2975_v35 = vpop.xlane.xlu1 %1549  ;;  %v1893_v20 = vsel %vm1682_vm4, %v1892_v62, %v1888_v15 }
 0x16f   :  { %v1517_v57 = vpop.xlane.xlu0 %1516 }
 0x170   :  { %v1477_v44 = vpop.xlane.xlu1 %1476  ;;  %v1794_v7 = vrot.slane %v1517_v57, %v2995_v41  ;;  %v1718_v57 = vsel %vm1717_vm9, %v1716_v22, %v2937_v59 }
 0x171   :  { %v1723_v23 = vrot.slane %v1477_v44, %v2995_v41 }
 0x172   :  { %v1795_v44 = vsel %vm1724_vm10, %v1794_v7, %v1790_v13 }
 0x173   :  { %v2977_v34 = vpop.xlane.xlu0 %1588  ;;  %v1725_v36 = vsel %vm1724_vm10, %v1723_v23, %v1718_v57 }
 0x174   :  { %v2979_v8 = vpop.xlane.xlu1 %1552 }
 0x175   :  { %v1853_v47 = vrot.slane %v2979_v8, %v2991_v38 }
 0x177   :  { %v1520_v55 = vpop.xlane.xlu0 %1519 }
 0x178   :  { %v1480_v12 = vpop.xlane.xlu1 %1479  ;;  %v1799_v19 = vrot.slane %v1520_v55, %v3000_v18 }
 0x179   :  { %v1730_v33 = vrot.slane %v1480_v12, %v3000_v18  ;;  %v1838_v12 = vrot.slane %v2965_v48, %v2920_v1  ;;  %v1848_v48 = vrot.slane %v2975_v35, %v2932_v32  ;;  %v1912_v1 = vrot.slane %v2977_v34, %v2932_v32 }
 0x17a   :  { %v1800_v4 = vsel %vm1731_vm11, %v1799_v19, %v1795_v44 }
 0x17b   :  { %v2983_v37 = vpop.xlane.xlu0 %1591  ;;  %v1732_v45 = vsel %vm1731_vm11, %v1730_v33, %v1725_v36  ;;  %v1839_v9 = vsel %vm1696_vm6, %v1838_v12, %v1834_v28 }
 0x17c   :  { %v2986_v3 = vpop.xlane.xlu1 %1555  ;;  %v1844_v5 = vsel %vm1703_vm7, %v1843_v43, %v1839_v9  ;;  %v1917_v61 = vrot.slane %v2983_v37, %v2991_v38 }
 0x17d   :  { %v1858_v35 = vrot.slane %v2986_v3, %v2995_v41  ;;  %v1849_v16 = vsel %vm1710_vm8, %v1848_v48, %v1844_v5  ;;  %v1898_v3 = vsel %vm1689_vm5, %v1897_v17, %v1893_v20 }
 0x17e   :  { %v1854_v25 = vsel %vm1717_vm9, %v1853_v47, %v1849_v16  ;;  %v1903_v24 = vsel %vm1696_vm6, %v1902_v42, %v1898_v3 }
 0x17f   :  { %v1523_v53 = vpop.xlane.xlu0 %1522  ;;  %v1859_v56 = vsel %vm1724_vm10, %v1858_v35, %v1854_v25  ;;  %v1908_v32 = vsel %vm1703_vm7, %v1907_v6, %v1903_v24 }
 0x180   :  { %v1483_v0 = vpop.xlane.xlu1 %1482  ;;  %v1804_v49 = vrot.slane %v1523_v53, %v3003_v21  ;;  %v1913_v37 = vsel %vm1710_vm8, %v1912_v1, %v1908_v32 }
 0x181   :  { %v1737_v26 = vrot.slane %v1483_v0, %v3003_v21  ;;  %v1918_v58 = vsel %vm1717_vm9, %v1917_v61, %v1913_v37 }
 0x182   :  { %v1805_v59 = vsel %vm1738_vm12, %v1804_v49, %v1800_v4 }
 0x183   :  { %v3019_v63 = vpop.xlane.xlu0 %1594  ;;  %v1739_v31 = vsel %vm1738_vm12, %v1737_v26, %v1732_v45 }
 0x184   :  { %v1559_v14 = vpop.xlane.xlu1 %1558  ;;  %v1922_v7 = vrot.slane %v3019_v63, %v2995_v41 }
 0x185   :  { %v1863_v8 = vrot.slane %v1559_v14, %v3000_v18 }
 0x186   :  { %v1923_v63 = vsel %vm1724_vm10, %v1922_v7, %v1918_v58 }
 0x187   :  { %v1526_v55 = vpop.xlane.xlu0 %1525  ;;  %v1864_v34 = vsel %vm1731_vm11, %v1863_v8, %v1859_v56 }
 0x188   :  { %v1809_v30 = vrot.slane %v1526_v55, %v3022_v40  ;;  %v1487_v39 = vpop.xlane.xlu1 %1486 }
 0x189   :  { %v1744_v51 = vrot.slane %v1487_v39, %v3022_v40 }
 0x18a   :  { %v1810_v53 = vsel %vm1745_vm13, %v1809_v30, %v1805_v59 }
 0x18b   :  { %v1746_v0 = vsel %vm1745_vm13, %v1744_v51, %v1739_v31  ;;  %v1598_v60 = vpop.xlane.xlu0 %1597 }
 0x18c   :  { %v1562_v46 = vpop.xlane.xlu1 %1561  ;;  %v1940_v11 = vsel %vm1939_vm14, %v1810_v53, %v1746_v0  ;;  %v1927_v23 = vrot.slane %v1598_v60, %v3000_v18 }
 0x18d   :  { %v1868_v54 = vrot.slane %v1562_v46, %v3003_v21 }
 0x18e   :  { %v1928_v18 = vsel %vm1731_vm11, %v1927_v23, %v1923_v63 }
 0x18f   :  { %v1601_v22 = vpop.xlane.xlu0 %1600  ;;  %v1869_v38 = vsel %vm1738_vm12, %v1868_v54, %v1864_v34 }
 0x190   :  { %v1565_v10 = vpop.xlane.xlu1 %1564  ;;  %v1932_v14 = vrot.slane %v1601_v22, %v3003_v21 }
 0x191   :  { %v1873_v19 = vrot.slane %v1565_v10, %v3022_v40 }
 0x192   :  { %v1933_v50 = vsel %vm1738_vm12, %v1932_v14, %v1928_v18 }
 0x193   :  { %v1874_v41 = vsel %vm1745_vm13, %v1873_v19, %v1869_v38 }
 0x194   :  { %v1604_v52 = vpop.xlane.xlu1 %1603  ;;  %v1942_v33 = vsel %vm1941_vm15, %v1874_v41, %v1940_v11 }
 0x195   :  { %v1937_v49 = vrot.slane %v1604_v52, %v3022_v40 }
 0x197   :  { %v1938_v21 = vsel %vm1745_vm13, %v1937_v49, %v1933_v50 }
 0x198   :  { %v1944_v2 = vsel %vm1943_vm0, %v1938_v21, %v1942_v33 }
 0x199   :  { %1947 = vst.msk [vmem:[#allocation2] sm:$0xf] %vm1946_vm1, %v1944_v2 }
 0x19a   :  { %1983 = shalt.err (!%p1980_p4)
}
 0x19b   :  { %1957 = dma.vmem_to_hbm [thread:$0]  %s1955_s12, 64, %s3108_s2, [#allocation3]  }
 0x19c   :  { %1992 = dma.done.wait [#allocation3], 64  }
 0x19d   :  { %1993 = vsyncadd [#allocation3], 4294967232 }
 0x19e   :  { %1961 = vsyncpa [#allocation3], 1 }

</bundles_post_ra>
